<compile_context>
chip_gen: v7x
topology: tpu7x:2x2x1
jax: 0.10.0
libtpu: 0.0.40
codegen_flags: <defaults>
</compile_context>

<pallas_src>
import functools

import jax
import jax.numpy as jnp
import numpy as np
from jax import lax
from jax.experimental import pallas as pl
from jax.experimental.pallas import tpu as pltpu

# MXU operand dtype.  f32 keeps the built-in reference check tight at this tiny,
# overhead-bound size; on v6e/v7x flip to jnp.bfloat16 for native-rate MXU
# (accumulation stays f32 via preferred_element_type) and re-verify tolerances.
MXU_DTYPE = jnp.float32


# -----------------------------------------------------------------------------
# helpers
# -----------------------------------------------------------------------------
def _round_up(x, m):
    return (x + m - 1) // m * m


def _tap_offsets(wp):
    # flat-index offset of conv tap (dy, dx) in the padded row-major layout
    return [(dy - 1) * wp + (dx - 1) for dy in range(3) for dx in range(3)]


@functools.lru_cache(maxsize=None)
def _pltpu_roll_matches_jnp():
    """Probe pltpu.roll's shift sign once (cached); asserted, run before tracing."""
    def k(x_ref, o_ref):
        o_ref[...] = pltpu.roll(x_ref[...], shift=1, axis=1)

    x = jnp.broadcast_to(jnp.arange(128, dtype=jnp.float32), (8, 128))
    y = pl.pallas_call(k, out_shape=jax.ShapeDtypeStruct((8, 128), jnp.float32))(x)
    y0 = float(y[0, 0])
    if abs(y0 - 127.0) < 0.5:
        return True        # out[p] = in[(p - shift) % n]   (jnp.roll convention)
    if abs(y0 - 1.0) < 0.5:
        return False       # out[p] = in[(p + shift) % n]
    raise AssertionError(f"unexpected pltpu.roll probe value {y0}")


def _shift_cols(x, off, mg):
    """Return s with s[:, p] = x[:, (p + off) % mg]  (off is a static Python int).
    The circular wrap is safe: interior lanes never read past the padded grid and
    border / lane-tail outputs are re-masked to zero downstream."""
    o = off % mg
    if o == 0:
        return x
    shift = (mg - o) % mg if _pltpu_roll_matches_jnp() else o
    return pltpu.roll(x, shift=shift, axis=1)


def _dot(a, b):
    return jnp.dot(a.astype(MXU_DTYPE), b.astype(MXU_DTYPE),
                   preferred_element_type=jnp.float32)


# constant (weight / mask) operands of the fused kernel, in call order
_CONST_KEYS = (
    "mask", "sel",
    "w1", "b1",
    "we", "be", "wf", "bf", "wr", "br",
    "ck", "cb",
    "e1k", "e1b", "e2k", "e2b",
    "rek", "reb", "rwc", "rbb", "rrk", "rrb",
    "c4k", "c4b",
    "w2", "b2", "wup", "bup",
)


# -----------------------------------------------------------------------------
# the fused whole-network kernel (one grid step == one image)
# -----------------------------------------------------------------------------
def _rlfn_kernel(x_ref, *rest, wp, mg, nb, nr, slope):
    cw = dict(zip(_CONST_KEYS, rest))
    o_ref = rest[len(_CONST_KEYS)]

    mask = cw["mask"][...]                                   # (1, Mg) interior selector
    sel = cw["sel"][...]                                     # (1, Mg) ESA pool taps
    offs = _tap_offsets(wp)

    def conv3x3(xmap, w_big, bias):
        # 9 lane-rolled copies stacked on sublanes -> ONE big-K MXU matmul
        stacked = jnp.concatenate([_shift_cols(xmap, off, mg) for off in offs], axis=0)
        return _dot(w_big, stacked) + bias

    # ---- conv1 (3x3, pad 1) ----
    out = conv3x3(x_ref[0], cw["w1"][...], cw["b1"][...]) * mask
    shortcut = out

    # ---- RLFB blocks (fully unrolled, everything stays on-chip) ----
    for b in range(nb):
        blk_in = out
        act = blk_in
        for r in range(nr):                                  # RRRB chain + LeakyReLU
            e = _dot(cw["we"][b, r], act) + cw["be"][b, r]   # 1x1 expand; border == bias
            fm = conv3x3(e, cw["wf"][b, r], cw["bf"][b, r]) + e
            o = _dot(cw["wr"][b, r], fm) + cw["br"][b, r] + act
            o = jnp.where(o > 0, o, slope * o)               # LeakyReLU(0.05)
            act = o * mask                                   # re-zero border ring + tail
        x1 = act + blk_in                                    # block shortcut
        y = (_dot(cw["ck"][b], x1) + cw["cb"][b]) * mask     # RLFB.conv (1x1)

        # ---- ESA, fully in-kernel (pooled map is 1x1 at this size) ----
        c1_ = _dot(cw["e1k"][b], y) + cw["e1b"][b]           # ESA.conv1 (1x1)
        c2 = conv3x3(c1_, cw["e2k"][b], cw["e2b"][b])        # stride-1 form of conv2
        pooled = jnp.max(jnp.where(sel > 0.0, c2, -1e30), axis=1, keepdims=True)
        pooled = jnp.broadcast_to(pooled, c2.shape)          # constant over lanes
        e = _dot(cw["rek"][b], pooled) + cw["reb"][b]        # ESA-RRRB expand
        fm = _dot(cw["rwc"][b], e) + cw["rbb"][b] + e        # 3x3 on 1x1 map: center tap
        v = _dot(cw["rrk"][b], fm) + cw["rrb"][b] + pooled   #   + precomputed bias-border
        z = _dot(cw["c4k"][b], v + c1_) + cw["c4b"][b]       # conv4(bilinear(v) + c1_)
        m = pl.reciprocal(1.0 + jnp.exp(-z), approx=True)    # sigmoid via EUP exp + recip
        out = y * m                                          # y's border is 0 -> stays 0

    # ---- conv2 (1x1) + long shortcut, conv_up (3x3) ----
    out = (_dot(cw["w2"][...], out) + cw["b2"][...] + shortcut) * mask
    up = conv3x3(out, cw["wup"][...], cw["bup"][...])
    o_ref[0] = up.astype(o_ref.dtype)


# -----------------------------------------------------------------------------
# boundary layout glue (plain XLA, only at network entry / exit)
# -----------------------------------------------------------------------------
def _to_flat(x_nchw, mg, c_pad):
    n, c, h, w = x_nchw.shape
    xp = jnp.pad(x_nchw, ((0, 0), (0, c_pad - c), (1, 1), (1, 1)))   # zero border + ch pad
    flat = xp.reshape(n, c_pad, (h + 2) * (w + 2))
    return jnp.pad(flat, ((0, 0), (0, 0), (0, mg - (h + 2) * (w + 2))))


def _from_flat(xf, h, w):
    n, c, _ = xf.shape
    hp, wp = h + 2, w + 2
    return xf[:, :, :hp * wp].reshape(n, c, hp, wp)[:, :, 1:-1, 1:-1]


def _make_mask(h, w, mg):
    hp, wp = h + 2, w + 2
    g = np.zeros((hp, wp), np.float32)
    g[1:-1, 1:-1] = 1.0
    m = np.zeros((1, mg), np.float32)
    m[0, :hp * wp] = g.reshape(-1)
    return jnp.asarray(m)


def _make_sel(h2, w2, wp, mg):
    s = np.zeros((1, mg), np.float32)
    for i in range(h2):
        for j in range(w2):
            s[0, (2 + 2 * i) * wp + (2 + 2 * j)] = 1.0
    return jnp.asarray(s)


def _pixel_shuffle_nchw(x, r):
    n, c, h, w = x.shape
    co = c // (r * r)
    x = x.reshape(n, co, r, r, h, w)
    x = jnp.transpose(x, (0, 1, 4, 2, 5, 3))
    return x.reshape(n, co, h * r, w * r)


# -----------------------------------------------------------------------------
# one-time weight packing (hoisted out of the jitted forward)
# -----------------------------------------------------------------------------
def _pack_w3(w):
    """(Co, Ci, 3, 3) torch conv weight -> (Co, 9*Ci) for the big-K tap matmul."""
    co, ci = w.shape[:2]
    return (jnp.transpose(w, (2, 3, 0, 1)).reshape(9, co, ci)
            .transpose(1, 0, 2).reshape(co, 9 * ci))


def pack_rlfn_params(params, h, w, scale=2):
    _pltpu_roll_matches_jnp()          # pin the roll convention before any tracing

    nf = params["c1k"].shape[0]
    in_c = params["c1k"].shape[1]
    upc = params["upk"].shape[0]
    blocks = params["blocks"]
    nb, nr = len(blocks), len(blocks[0]["rrrbs"])
    mid = blocks[0]["rrrbs"][0]["ek"].shape[0]
    f = blocks[0]["esa"]["c1k"].shape[0]
    assert nf % 8 == 0 and mid % 8 == 0 and f % 8 == 0

    cin_p = _round_up(in_c, 8)
    upc_p = _round_up(upc, 8)
    hp, wp = h + 2, w + 2
    mg = _round_up(hp * wp, 128)

    h2, w2 = (h - 3) // 2 + 1, (w - 3) // 2 + 1
    assert h2 == 7 and w2 == 7, (
        f"fused ESA path assumes a 7x7 conv2 output (H, W in {{15, 16}}), got {h2}x{w2}")

    def col(v):
        return v.reshape(-1, 1)

    def esa_border_bias(rr):       # precomputed (sum of 8 border taps) @ eb + fb
        fk = rr["fk"]
        return col((fk.sum(axis=(2, 3)) - fk[:, :, 1, 1]) @ rr["eb"] + rr["fb"])

    packed = {
        "mask": _make_mask(h, w, mg),
        "sel": _make_sel(h2, w2, wp, mg),
        "w1": _pack_w3(jnp.pad(params["c1k"], ((0, 0), (0, cin_p - in_c), (0, 0), (0, 0)))),
        "b1": col(params["c1b"]),
        "we": jnp.stack([jnp.stack([r["ek"] for r in bp["rrrbs"]]) for bp in blocks]),
        "be": jnp.stack([jnp.stack([col(r["eb"]) for r in bp["rrrbs"]]) for bp in blocks]),
        "wf": jnp.stack([jnp.stack([_pack_w3(r["fk"]) for r in bp["rrrbs"]]) for bp in blocks]),
        "bf": jnp.stack([jnp.stack([col(r["fb"]) for r in bp["rrrbs"]]) for bp in blocks]),
        "wr": jnp.stack([jnp.stack([r["rk"] for r in bp["rrrbs"]]) for bp in blocks]),
        "br": jnp.stack([jnp.stack([col(r["rb"]) for r in bp["rrrbs"]]) for bp in blocks]),
        "ck": jnp.stack([bp["ck"] for bp in blocks]),
        "cb": jnp.stack([col(bp["cb"]) for bp in blocks]),
        "e1k": jnp.stack([bp["esa"]["c1k"] for bp in blocks]),
        "e1b": jnp.stack([col(bp["esa"]["c1b"]) for bp in blocks]),
        "e2k": jnp.stack([_pack_w3(bp["esa"]["c2k"]) for bp in blocks]),
        "e2b": jnp.stack([col(bp["esa"]["c2b"]) for bp in blocks]),
        "rek": jnp.stack([bp["esa"]["rrrb"]["ek"] for bp in blocks]),
        "reb": jnp.stack([col(bp["esa"]["rrrb"]["eb"]) for bp in blocks]),
        "rwc": jnp.stack([bp["esa"]["rrrb"]["fk"][:, :, 1, 1] for bp in blocks]),
        "rbb": jnp.stack([esa_border_bias(bp["esa"]["rrrb"]) for bp in blocks]),
        "rrk": jnp.stack([bp["esa"]["rrrb"]["rk"] for bp in blocks]),
        "rrb": jnp.stack([col(bp["esa"]["rrrb"]["rb"]) for bp in blocks]),
        "c4k": jnp.stack([bp["esa"]["c4k"] for bp in blocks]),
        "c4b": jnp.stack([col(bp["esa"]["c4b"]) for bp in blocks]),
        "w2": params["c2k"],
        "b2": col(params["c2b"]),
        "wup": _pack_w3(jnp.pad(params["upk"], ((0, upc_p - upc), (0, 0), (0, 0), (0, 0)))),
        "bup": col(jnp.pad(params["upb"], (0, upc_p - upc))),
    }
    meta = dict(h=h, w=w, wp=wp, mg=mg, nb=nb, nr=nr, nf=nf, mid=mid, f=f,
                cin_p=cin_p, in_c=in_c, upc=upc, upc_p=upc_p, scale=scale)
    return packed, meta


# -----------------------------------------------------------------------------
# forward: one fused pallas_call + boundary glue
# -----------------------------------------------------------------------------
def rlfn_forward(packed, x_nchw, *, meta):
    n = x_nchw.shape[0]
    h, w, wp, mg = meta["h"], meta["w"], meta["wp"], meta["mg"]
    nb, nr = meta["nb"], meta["nr"]
    nf, mid, f = meta["nf"], meta["mid"], meta["f"]
    cin_p, upc, upc_p = meta["cin_p"], meta["upc"], meta["upc_p"]

    x_flat = _to_flat(x_nchw, mg, cin_p)
    consts = [packed[k] for k in _CONST_KEYS]

    kernel = functools.partial(_rlfn_kernel, wp=wp, mg=mg, nb=nb, nr=nr, slope=0.05)

    # advisory cost estimate so XLA schedules the tiny boundary glue around the call
    k_terms = (nf * 9 * cin_p
               + nb * nr * (mid * nf + mid * 9 * mid + nf * mid)
               + nb * (nf * nf + f * nf + f * 9 * f
                       + 2 * f * f + (2 * f) * (2 * f) + f * 2 * f + nf * f)
               + nf * nf + upc_p * 9 * nf)
    cost = pl.CostEstimate(
        flops=2 * n * mg * k_terms,
        transcendentals=n * nb * nf * mg,
        bytes_accessed=int(x_flat.size * 4 + n * upc_p * mg * 4
                           + sum(c.size * 4 for c in consts)))

    out_flat = pl.pallas_call(
        kernel,
        out_shape=jax.ShapeDtypeStruct((n, upc_p, mg), jnp.float32),
        grid_spec=pltpu.PrefetchScalarGridSpec(
            num_scalar_prefetch=0,
            grid=(n,),
            in_specs=[pl.BlockSpec((1, cin_p, mg), lambda i: (i, 0, 0))]
                     + [pl.BlockSpec(c.shape, lambda i, _nd=c.ndim: (0,) * _nd)
                        for c in consts],
            out_specs=pl.BlockSpec((1, upc_p, mg), lambda i: (i, 0, 0)),
        ),
        compiler_params=pltpu.CompilerParams(
            # batch split across TensorCores where the part has more than one
            # (v7x); on single-TC v5e/v6e this is just a short serial loop.
            dimension_semantics=("parallel",)),
        cost_estimate=cost,
    )(x_flat, *consts)

    out = _from_flat(out_flat[:, :upc], h, w)            # drop channel padding + border
    return _pixel_shuffle_nchw(out, meta["scale"])


# -----------------------------------------------------------------------------
# plain-XLA reference (same math as the PyTorch module) for the built-in check
# -----------------------------------------------------------------------------
def _ref_conv(x, w, b, stride=1, padding=0):
    if w.ndim == 2:
        w = w[:, :, None, None]
    out = lax.conv_general_dilated(
        x, w, window_strides=(stride, stride),
        padding=((padding, padding), (padding, padding)),
        dimension_numbers=("NCHW", "OIHW", "NCHW"),
        precision=lax.Precision.HIGHEST)
    return out + b.reshape(1, -1, 1, 1)


def _ref_rrrb(x, p):
    out = _ref_conv(x, p["ek"], p["eb"])
    ident = out
    b0 = p["eb"].reshape(1, -1, 1, 1)
    out = jnp.pad(out, ((0, 0), (0, 0), (1, 1), (1, 1)))
    out = out.at[:, :, :1, :].set(b0)
    out = out.at[:, :, -1:, :].set(b0)
    out = out.at[:, :, :, :1].set(b0)
    out = out.at[:, :, :, -1:].set(b0)
    out = _ref_conv(out, p["fk"], p["fb"]) + ident
    out = _ref_conv(out, p["rk"], p["rb"]) + x
    return out


def _ref_esa(x, p):
    n, c, h, w = x.shape
    c1_ = _ref_conv(x, p["c1k"], p["c1b"])
    c1 = _ref_conv(c1_, p["c2k"], p["c2b"], stride=2, padding=0)
    c1 = lax.reduce_window(c1, -jnp.inf, lax.max, (1, 1, 7, 7), (1, 1, 3, 3), "VALID")
    c1 = _ref_rrrb(c1, p["rrrb"])
    c1 = jax.image.resize(c1, (n, c1.shape[1], h, w), method="bilinear")
    c1 = _ref_conv(c1 + c1_, p["c4k"], p["c4b"])
    return x * (1.0 / (1.0 + jnp.exp(-c1)))


def _ref_rlfb(x, p):
    shortcut = x
    for rp in p["rrrbs"]:
        x = _ref_rrrb(x, rp)
        x = jnp.where(x > 0, x, 0.05 * x)
    x = x + shortcut
    x = _ref_conv(x, p["ck"], p["cb"])
    return _ref_esa(x, p["esa"])


def _ref_rlfn(params, x, scale=2):
    out = _ref_conv(x, params["c1k"], params["c1b"], padding=1)
    shortcut = out
    for bp in params["blocks"]:
        out = _ref_rlfb(out, bp)
    out = _ref_conv(out, params["c2k"], params["c2b"]) + shortcut
    out = _ref_conv(out, params["upk"], params["upb"], padding=1)
    return _pixel_shuffle_nchw(out, scale)


# -----------------------------------------------------------------------------
# deterministic parameter construction (shapes from the module __init__)
# -----------------------------------------------------------------------------
class _KeyGen:
    def __init__(self, key):
        self.key = key

    def __call__(self):
        self.key, sub = jax.random.split(self.key)
        return sub


def _conv_params(kg, cout, cin, k):
    w = jax.random.normal(kg(), (cout, cin, k, k), jnp.float32) * 0.05
    b = jax.random.normal(kg(), (cout,), jnp.float32) * 0.01
    if k == 1:
        w = w[:, :, 0, 0]
    return w, b


def init_rrrb(kg, n_feats, ratio=2):
    mid = n_feats * ratio
    ek, eb = _conv_params(kg, mid, n_feats, 1)
    fk, fb = _conv_params(kg, mid, mid, 3)
    rk, rb = _conv_params(kg, n_feats, mid, 1)
    return {"ek": ek, "eb": eb, "fk": fk, "fb": fb, "rk": rk, "rb": rb}


def init_esa(kg, in_c, mid_c):
    c1k, c1b = _conv_params(kg, mid_c, in_c, 1)
    c2k, c2b = _conv_params(kg, mid_c, mid_c, 3)
    rrrb = init_rrrb(kg, mid_c, ratio=2)
    c4k, c4b = _conv_params(kg, in_c, mid_c, 1)
    return {"c1k": c1k, "c1b": c1b, "c2k": c2k, "c2b": c2b,
            "rrrb": rrrb, "c4k": c4k, "c4b": c4b}


def init_rlfb(kg, n_feats, n_rrrb, esa_c, ratio):
    rrrbs = [init_rrrb(kg, n_feats, ratio) for _ in range(n_rrrb)]
    ck, cb = _conv_params(kg, n_feats, n_feats, 1)
    esa = init_esa(kg, n_feats, esa_c)
    return {"rrrbs": rrrbs, "ck": ck, "cb": cb, "esa": esa}


def init_rlfn(key, in_c=3, n_feats=16, n_rrrb=2, n_blocks=2, esa_c=8, ratio=2, scale=2):
    kg = _KeyGen(key)
    c1k, c1b = _conv_params(kg, n_feats, in_c, 3)
    blocks = [init_rlfb(kg, n_feats, n_rrrb, esa_c, ratio) for _ in range(n_blocks)]
    c2k, c2b = _conv_params(kg, n_feats, n_feats, 1)
    upk, upb = _conv_params(kg, in_c * scale ** 2, n_feats, 3)
    return {"c1k": c1k, "c1b": c1b, "blocks": blocks,
            "c2k": c2k, "c2b": c2b, "upk": upk, "upb": upb}


# -----------------------------------------------------------------------------
if __name__ == "__main__":
    key = jax.random.PRNGKey(0)
    pkey, xkey = jax.random.split(key)

    SCALE = 2
    N, H, W = 2, 16, 16
    params = init_rlfn(pkey, in_c=3, n_feats=16, n_rrrb=2, n_blocks=2,
                       esa_c=8, ratio=2, scale=SCALE)
    x = jax.random.normal(xkey, (N, 3, H, W), jnp.float32)        # NCHW like the module

    packed, meta = pack_rlfn_params(params, H, W, scale=SCALE)    # also pins roll probe
    fwd = jax.jit(functools.partial(rlfn_forward, meta=meta))
    out = jax.block_until_ready(fwd(packed, x))

    assert out.shape == (N, 3, H * SCALE, W * SCALE), out.shape
    assert out.dtype == jnp.float32

    # validate against a plain-XLA implementation of the same module
    ref = jax.block_until_ready(jax.jit(functools.partial(_ref_rlfn, scale=SCALE))(params, x))
    max_diff = float(jnp.max(jnp.abs(out - ref)))
    assert bool(jnp.allclose(out, ref, rtol=2e-2, atol=3e-3)), (
        "max abs diff vs reference: %e" % max_diff)

    print("KERNEL_OK")
</pallas_src>

<mosaic_0001>
module attributes {stable_mosaic.version = 11 : i64} {
  func.func @k(%arg0: memref<8x128xf32, #tpu.memory_space<vmem>>, %arg1: memref<8x128xf32, #tpu.memory_space<vmem>>) attributes {dimension_semantics = [], scalar_prefetch = 0 : i64, scratch_operands = 0 : i64, tpu.core_type = #tpu.core_type<tc>} {
    %c0 = arith.constant 0 : index
    %c0_0 = arith.constant 0 : index
    %0 = vector.load %arg0[%c0, %c0_0] : memref<8x128xf32, #tpu.memory_space<vmem>>, vector<8x128xf32>
    %c1_i32 = arith.constant 1 : i32
    %1 = tpu.dynamic_rotate %0 by %c1_i32 dim 1 : vector<8x128xf32>, i32 -> vector<8x128xf32>
    %c0_1 = arith.constant 0 : index
    %c0_2 = arith.constant 0 : index
    %2 = vector.load %arg1[%c0_1, %c0_2] : memref<8x128xf32, #tpu.memory_space<vmem>>, vector<8x128xf32>
    tpu.vector_store %arg1[%c0_1, %c0_2], %1 {strides = array<i32>} : memref<8x128xf32, #tpu.memory_space<vmem>>, vector<8x128xf32>,
    return
  }
}

</mosaic_0001>

<bundles_post_ra>
// kernel: tpu_custom_call.1
= control target key start
LH: loop header
LB: loop body
LE: loop exit
PB: predicated region body
PF: predicated region fallthrough
CT: control target
= control target key end

     0   :  { %6 = vsyncpa [#allocation3], 0  ;;  %s128_s0 = inlined_call_operand.hbm [shape: f32[8,128], index: 0, kind: input, shape index: {}]   ;;  %s129_s1 = inlined_call_operand.hbm [shape: f32[8,128], index: 1, kind: output, shape index: {}]  }
   0x1   :  { %7 = vsyncpa [#allocation4], 0  ;;  %s91_s6 = smov [#allocation2]   ;;  %s43_s10 = scalar_lea.hbm %s128_s0, 128 }
   0x2   :  { %s14_s7 = sshll.u32 %s91_s6, 4  ;;  %p44_p0 = scmp.ne.s32.totalorder %s128_s0, %s43_s10  ;;  %s15_s7 = int_to_ptr.vmem [resolvable:$true] %s14_s7 }
   0x3   :  { %p47_p1 = scmp.lt.u32.totalorder %s43_s10, %s128_s0 }
   0x5   :  { %p49_p2 = pnand %p47_p1, %p44_p0 }
   0x7   :  { %52 = shalt.err (!%p49_p2)
}
   0x8   :  { %s53_s15 = scalar_lea.vmem %s15_s7, 128  ;;  %p58_p4 = scmp.lt.s32.totalorder %s15_s7, %s15_s7 }
   0x9   :  { %p54_p3 = scmp.ne.s32.totalorder %s15_s7, %s53_s15  ;;  %p59_p5 = scmp.lt.s32.totalorder %s53_s15, %s53_s15 }
   0xb   :  { %p60_p6 = por %p59_p5, %p58_p4 }
   0xd   :  { %p61_p7 = pnand %p60_p6, %p54_p3 }
   0xf   :  { %64 = shalt.err (!%p61_p7)
}
  0x10   :  { %17 = dma.hbm_to_vmem [thread:$0]  %s128_s0, 128, %s15_s7, [#allocation3]  }
  0x11   :  { %87 = dma.done.wait [#allocation3], 128  }
  0x12   :  { %88 = vsyncadd [#allocation3], 4294967168  ;;  %v21_v0 = vld [vmem:[#allocation2] sm:$0xff]  ;;  %s92_s18 = smov 1   ;;  %s93_s19 = smov [#allocation5]  }
  0x13   :  { %22 = vrot.lane.b32.xlu0 %v21_v0, %s92_s18  ;;  %s31_s20 = sshll.u32 %s93_s19, 4  ;;  %s32_s20 = int_to_ptr.vmem [resolvable:$true] %s31_s20 }
  0x14   :  { %s65_s21 = scalar_lea.vmem %s32_s20, 128  ;;  %p70_p9 = scmp.lt.s32.totalorder %s32_s20, %s32_s20 }
  0x15   :  { %p66_p8 = scmp.ne.s32.totalorder %s32_s20, %s65_s21  ;;  %p71_p10 = scmp.lt.s32.totalorder %s65_s21, %s65_s21 }
  0x17   :  { %p72_p11 = por %p71_p10, %p70_p9 }
  0x19   :  { %p73_p12 = pnand %p72_p11, %p66_p8 }
  0x85   :  { %v23_v1 = vpop.permute.xlu0 %22 }
  0x86   :  { %24 = vst [vmem:[#allocation5] sm:$0xff] %v23_v1 }
  0x87   :  { %76 = shalt.err (!%p73_p12)
}
  0x88   :  { %s77_s0 = scalar_lea.hbm %s129_s1, 128 }
  0x89   :  { %p78_p13 = scmp.ne.s32.totalorder %s129_s1, %s77_s0  ;;  %p81_p0 = scmp.lt.u32.totalorder %s77_s0, %s129_s1 }
  0x8b   :  { %p83_p1 = pnand %p81_p0, %p78_p13 }
  0x8d   :  { %86 = shalt.err (!%p83_p1)
}
  0x8e   :  { %34 = dma.vmem_to_hbm [thread:$0]  %s32_s20, 128, %s129_s1, [#allocation4]  }
  0x8f   :  { %89 = dma.done.wait [#allocation4], 128  }
  0x90   :  { %90 = vsyncadd [#allocation4], 4294967168 }
  0x91   :  { %38 = vsyncpa [#allocation3], 1 }
  0x92   :  { %39 = vsyncpa [#allocation4], 1 }

</bundles_post_ra>
